<compile_context>
chip_gen: v7x
topology: tpu7x:2x2x1
jax: 0.10.0
libtpu: 0.0.40
codegen_flags: <defaults>
</compile_context>

<pallas_src>
import functools
import math

import jax
import jax.numpy as jnp
from jax import lax
from jax.experimental import pallas as pl
from jax.experimental.pallas import tpu as pltpu


def _round_up(v, m):
    return -(-v // m) * m


def _seq_alloc_kernel(x_ref, wt_ref, b_ref, o_ref, *, slots, bidders, slot_weights):
    # x_ref  : (TM, H_in)              VMEM (row tile)
    # wt_ref : (H_in, S*(B+1))         VMEM (pre-transposed weight, resident)
    # b_ref  : (1, S*(B+1))            VMEM (resident)
    # o_ref  : (TM, B)                 VMEM
    bp1 = bidders + 1

    x = x_ref[...]
    wt = wt_ref[...]
    b = b_ref[...].astype(jnp.float32)

    # Plain row-major (TM, H_in) @ (H_in, S*(B+1)) -> (TM, S*(B+1)); no RHS relayout.
    z = jnp.dot(x, wt, preferred_element_type=jnp.float32) + b

    def slot_probs(k):
        # Static lane slice of the k-th slot's logits, width bidders+1.
        zk = z[:, k * bp1:(k + 1) * bp1]
        m = jnp.max(zk, axis=-1, keepdims=True)
        e = jnp.exp(zk - m)
        return e / jnp.sum(e, axis=-1, keepdims=True)

    # Sequential allocation recurrence (slots is small -> unrolled at trace time).
    p0 = slot_probs(0)
    cum = p0[:, :bidders]
    alloc = cum if slot_weights is None else cum * slot_weights[0]
    prev_none = p0[:, bidders:bp1]          # P(slot k-1 went unallocated), bcast over bidders
    for k in range(1, slots):
        pk = slot_probs(k)
        slot_total = (1.0 - cum) * pk[:, :bidders] * (1.0 - prev_none)
        alloc = alloc + (slot_total if slot_weights is None
                         else slot_total * slot_weights[k])
        cum = cum + slot_total
        prev_none = pk[:, bidders:bp1]

    o_ref[...] = alloc.astype(o_ref.dtype)


def _device_vmem_budget():
    """(row-scaled VMEM budget bytes, vmem_limit_bytes) per TPU generation."""
    try:
        kind = jax.devices()[0].device_kind.lower()
    except Exception:  # pragma: no cover
        kind = ""
    if "v7" in kind:
        # 64 MiB physical VMEM per TensorCore: conservative slice, explicit limit w/ headroom.
        return 32 << 20, 48 << 20
    if "v6" in kind:
        # 128 MiB physical, 32 MiB default scoped: raise explicitly.
        return 56 << 20, 96 << 20
    if "v5e" in kind or "v5 lite" in kind or "v5lite" in kind:
        # 128 MiB physical, 16 MiB default scoped; lower HBM BW saturates at smaller tiles.
        return 32 << 20, 64 << 20
    # Unknown / older generations: conservative.
    return 24 << 20, 48 << 20


def _derive_tile_rows(n, in_features, out_features, bidders, x_itemsize):
    """Row tile sized from a VMEM budget with correct 128-lane padding accounting."""
    lane = 128
    n_pad = _round_up(max(n, 1), 8)
    in_pad = _round_up(in_features, lane)      # (tm, 32) f32 block occupies tm*128*4 B of VMEM
    out_pad = _round_up(max(bidders, 1), lane)
    z_pad = _round_up(out_features, lane)

    # VMEM bytes per tile row:
    #   x tile (double-buffered, lane-padded) + output tile (double-buffered, lane-padded)
    #   + f32 compute temporaries (z plus a handful of per-slot softmax/recurrence temps).
    bytes_per_row = (2 * in_pad * x_itemsize
                     + 2 * out_pad * x_itemsize
                     + 4 * (z_pad + 4 * lane))

    row_budget, vmem_limit = _device_vmem_budget()
    tm = (row_budget // bytes_per_row) // 8 * 8
    tm = int(max(8, min(tm, 32768)))
    tm = min(tm, n_pad)

    # Keep >= ~4 grid steps when the input is large enough to matter: 2-TC load balance
    # on v7x and software pipelining in general.
    if n_pad >= 4 * 2048:
        tm = min(tm, max(2048, _round_up(pl.cdiv(n_pad, 4), 8)))
    return tm, vmem_limit


def sequential_allocation_forward(x, weight, bias, *, slots, bidders,
                                  weights=None, tm=None):
    """Pallas equivalent of SequentialAllocation.forward.

    x:      (..., in_features)                 (f32 or bf16; accumulation is f32)
    weight: (slots*(bidders+1), in_features)   -- PyTorch Linear layout
    bias:   (slots*(bidders+1),)
    weights: optional length-`slots` sequence of per-slot scalar weights (or None)
    tm:     optional row-tile override (rounded to a multiple of 8); default auto-sized
    returns (prod(leading dims), bidders)      -- same flattening as the PyTorch module
    """
    in_features = weight.shape[1]
    out_features = weight.shape[0]
    assert out_features == slots * (bidders + 1)

    x2d = x.reshape(-1, in_features)
    n = x2d.shape[0]
    n_pad = _round_up(max(n, 1), 8)

    # One-time (few-KiB) wrapper transpose -> plain row-major contraction in the kernel.
    wt = jnp.transpose(weight)                 # (in_features, out_features)
    b2d = bias.reshape(1, out_features)

    itemsize = jnp.dtype(x2d.dtype).itemsize
    tm_auto, vmem_limit = _derive_tile_rows(n, in_features, out_features, bidders, itemsize)
    if tm is None:
        tm = tm_auto
    else:
        tm = max(8, min(_round_up(int(tm), 8), n_pad))

    grid = (pl.cdiv(n, tm),)

    # NOTE: slot weights are baked in as Python constants (recompile if they change;
    # not traceable/differentiable — fine for a fixed-config forward).
    slot_w = None if weights is None else tuple(float(w) for w in weights)
    kernel = functools.partial(_seq_alloc_kernel, slots=slots, bidders=bidders,
                               slot_weights=slot_w)

    # Advisory cost hint: this op is HBM-read bound (K=in_features, tiny output width).
    flops = 2 * n * in_features * out_features + 8 * n * slots * bidders
    transcendentals = n * slots * (bidders + 1)
    bytes_accessed = (itemsize * n * in_features
                      + 4 * (out_features * in_features + out_features)
                      + itemsize * n * bidders)

    out2d = pl.pallas_call(
        kernel,
        out_shape=jax.ShapeDtypeStruct((n, bidders), x.dtype),
        grid_spec=pl.GridSpec(
            grid=grid,
            in_specs=[
                pl.BlockSpec((tm, in_features), lambda i: (i, 0)),
                # Constant block index -> weight/bias DMA'd once, stay resident.
                pl.BlockSpec((in_features, out_features), lambda i: (0, 0)),
                pl.BlockSpec((1, out_features), lambda i: (0, 0)),
            ],
            out_specs=pl.BlockSpec((tm, bidders), lambda i: (i, 0)),
        ),
        compiler_params=pltpu.CompilerParams(
            # TODO(synk): if v7x profiling shows one TensorCore idle, switch the row
            # axis to pltpu.CORE_PARALLEL (or pl.core_map with an explicit core split).
            dimension_semantics=("parallel",),
            vmem_limit_bytes=vmem_limit,
        ),
        cost_estimate=pl.CostEstimate(
            flops=int(flops),
            transcendentals=int(transcendentals),
            bytes_accessed=int(bytes_accessed),
        ),
    )(x2d, wt, b2d)

    # Output stays exactly (N, bidders): narrow masked stores are ~12% of HBM traffic
    # and non-binding; padding to 128 lanes would multiply output HBM write bytes.
    return out2d


def init_params(key, in_features, slots, bidders, dtype=jnp.float32):
    """torch.nn.Linear default init: U(-1/sqrt(in_features), 1/sqrt(in_features))."""
    out_features = slots * (bidders + 1)
    kw, kb = jax.random.split(key)
    bound = 1.0 / math.sqrt(in_features)
    weight = jax.random.uniform(kw, (out_features, in_features), dtype=dtype,
                                minval=-bound, maxval=bound)
    bias = jax.random.uniform(kb, (out_features,), dtype=dtype,
                              minval=-bound, maxval=bound)
    return weight, bias


def _reference(x, weight, bias, slots, bidders, weights=None):
    """Plain-JAX reference mirroring the PyTorch module."""
    z = x.reshape(-1, weight.shape[1]) @ weight.T + bias
    p = jax.nn.softmax(z.reshape(-1, slots, bidders + 1), axis=2)
    cum = p[:, 0, :bidders]
    alloc = cum if weights is None else cum * weights[0]
    for k in range(1, slots):
        slot_total = (1 - cum) * p[:, k, :bidders] * (1 - p[:, k - 1, bidders:bidders + 1])
        alloc = alloc + (slot_total if weights is None else slot_total * weights[k])
        cum = cum + slot_total
    return alloc


if __name__ == "__main__":
    key = jax.random.PRNGKey(0)
    k_x, k_p, k_x2 = jax.random.split(key, 3)

    in_features = 32
    slots = 4
    bidders = 4

    weight, bias = init_params(k_p, in_features, slots, bidders)

    # 1) Small single-tile case (auto tile sizing).
    x = jax.random.normal(k_x, (8, in_features), dtype=jnp.float32)
    out = sequential_allocation_forward(x, weight, bias, slots=slots, bidders=bidders)
    out = jax.block_until_ready(out)
    ref = _reference(x, weight, bias, slots, bidders)
    assert out.shape == (8, bidders)
    assert jnp.allclose(out, ref, atol=1e-5, rtol=1e-5), float(jnp.max(jnp.abs(out - ref)))

    # 2) Multi-step grid with a ragged tail (exercises the masked-store path), small tm.
    x2 = jax.random.normal(k_x2, (300, in_features), dtype=jnp.float32)
    out2 = jax.block_until_ready(
        sequential_allocation_forward(x2, weight, bias, slots=slots, bidders=bidders, tm=128))
    ref2 = _reference(x2, weight, bias, slots, bidders)
    assert out2.shape == (300, bidders)
    assert jnp.allclose(out2, ref2, atol=1e-5, rtol=1e-5), float(jnp.max(jnp.abs(out2 - ref2)))

    # 3) Per-slot weights path.
    slot_w = (1.0, 0.75, 0.5, 0.25)
    out3 = jax.block_until_ready(
        sequential_allocation_forward(x, weight, bias, slots=slots, bidders=bidders,
                                      weights=slot_w))
    ref3 = _reference(x, weight, bias, slots, bidders, weights=slot_w)
    assert jnp.allclose(out3, ref3, atol=1e-5, rtol=1e-5), float(jnp.max(jnp.abs(out3 - ref3)))

    print("KERNEL_OK")
</pallas_src>

<mosaic_0001>
module attributes {stable_mosaic.version = 11 : i64} {
  func.func @_seq_alloc_kernel(%arg0: i32, %arg1: memref<8x32xf32, #tpu.memory_space<vmem>>, %arg2: memref<32x20xf32, #tpu.memory_space<vmem>>, %arg3: memref<1x20xf32, #tpu.memory_space<vmem>>, %arg4: memref<8x4xf32, #tpu.memory_space<vmem>>) attributes {dimension_semantics = [#tpu.dimension_semantics<parallel>], iteration_bounds = array<i64: 1>, scalar_prefetch = 0 : i64, scratch_operands = 0 : i64, tpu.core_type = #tpu.core_type<tc>, window_params = [{transform_indices = @transform_0, window_bounds = array<i64: 8, 32>}, {pipeline_mode = #tpu.pipeline_mode<synchronous>, transform_indices = @transform_1, window_bounds = array<i64: 32, 20>}, {pipeline_mode = #tpu.pipeline_mode<synchronous>, transform_indices = @transform_2, window_bounds = array<i64: 1, 20>}, {transform_indices = @transform_3, window_bounds = array<i64: 8, 4>}]} {
    %c0 = arith.constant 0 : index
    %c0_0 = arith.constant 0 : index
    %0 = vector.load %arg1[%c0, %c0_0] : memref<8x32xf32, #tpu.memory_space<vmem>>, vector<8x32xf32>
    %c0_1 = arith.constant 0 : index
    %c0_2 = arith.constant 0 : index
    %1 = vector.load %arg2[%c0_1, %c0_2] : memref<32x20xf32, #tpu.memory_space<vmem>>, vector<32x20xf32>
    %c0_3 = arith.constant 0 : index
    %c0_4 = arith.constant 0 : index
    %2 = vector.load %arg3[%c0_3, %c0_4] : memref<1x20xf32, #tpu.memory_space<vmem>>, vector<1x20xf32>
    %cst = arith.constant dense<0.000000e+00> : vector<8x20xf32>
    %3 = tpu.matmul %0, %1, %cst {dimension_numbers = #tpu.dot_dimension_numbers<[1], [0], [0], [1], [0, 0, 1, 1], [], []>} : vector<8x32xf32>, vector<32x20xf32>, vector<8x20xf32> -> vector<8x20xf32>
    %4 = vector.broadcast %2 : vector<1x20xf32> to vector<8x20xf32>
    %5 = arith.addf %3, %4 : vector<8x20xf32>
    %6 = vector.extract_strided_slice %5 {offsets = [0, 0], sizes = [8, 5], strides = [1, 1]} : vector<8x20xf32> to vector<8x5xf32>
    %cst_5 = arith.constant dense<0xFF800000> : vector<8xf32>
    %7 = vector.multi_reduction <maximumf>, %6, %cst_5 [1] : vector<8x5xf32> to vector<8xf32>
    %8 = vector.shape_cast %7 : vector<8xf32> to vector<8x1xf32>
    %9 = vector.broadcast %8 : vector<8x1xf32> to vector<8x5xf32>
    %10 = arith.subf %6, %9 : vector<8x5xf32>
    %11 = math.exp %10 : vector<8x5xf32>
    %cst_6 = arith.constant dense<0.000000e+00> : vector<8xf32>
    %12 = vector.multi_reduction <add>, %11, %cst_6 [1] : vector<8x5xf32> to vector<8xf32>
    %13 = vector.shape_cast %12 : vector<8xf32> to vector<8x1xf32>
    %14 = vector.broadcast %13 : vector<8x1xf32> to vector<8x5xf32>
    %15 = arith.divf %11, %14 : vector<8x5xf32>
    %16 = vector.extract_strided_slice %15 {offsets = [0, 0], sizes = [8, 4], strides = [1, 1]} : vector<8x5xf32> to vector<8x4xf32>
    %17 = vector.extract_strided_slice %15 {offsets = [0, 4], sizes = [8, 1], strides = [1, 1]} : vector<8x5xf32> to vector<8x1xf32>
    %18 = vector.extract_strided_slice %5 {offsets = [0, 5], sizes = [8, 5], strides = [1, 1]} : vector<8x20xf32> to vector<8x5xf32>
    %cst_7 = arith.constant dense<0xFF800000> : vector<8xf32>
    %19 = vector.multi_reduction <maximumf>, %18, %cst_7 [1] : vector<8x5xf32> to vector<8xf32>
    %20 = vector.shape_cast %19 : vector<8xf32> to vector<8x1xf32>
    %21 = vector.broadcast %20 : vector<8x1xf32> to vector<8x5xf32>
    %22 = arith.subf %18, %21 : vector<8x5xf32>
    %23 = math.exp %22 : vector<8x5xf32>
    %cst_8 = arith.constant dense<0.000000e+00> : vector<8xf32>
    %24 = vector.multi_reduction <add>, %23, %cst_8 [1] : vector<8x5xf32> to vector<8xf32>
    %25 = vector.shape_cast %24 : vector<8xf32> to vector<8x1xf32>
    %26 = vector.broadcast %25 : vector<8x1xf32> to vector<8x5xf32>
    %27 = arith.divf %23, %26 : vector<8x5xf32>
    %cst_9 = arith.constant 1.000000e+00 : f32
    %28 = vector.broadcast %cst_9 : f32 to vector<8x4xf32>
    %29 = arith.subf %28, %16 : vector<8x4xf32>
    %30 = vector.extract_strided_slice %27 {offsets = [0, 0], sizes = [8, 4], strides = [1, 1]} : vector<8x5xf32> to vector<8x4xf32>
    %31 = arith.mulf %29, %30 : vector<8x4xf32>
    %cst_10 = arith.constant 1.000000e+00 : f32
    %32 = vector.broadcast %cst_10 : f32 to vector<8x1xf32>
    %33 = arith.subf %32, %17 : vector<8x1xf32>
    %34 = vector.broadcast %33 : vector<8x1xf32> to vector<8x4xf32>
    %35 = arith.mulf %31, %34 : vector<8x4xf32>
    %36 = arith.addf %16, %35 : vector<8x4xf32>
    %37 = arith.addf %16, %35 : vector<8x4xf32>
    %38 = vector.extract_strided_slice %27 {offsets = [0, 4], sizes = [8, 1], strides = [1, 1]} : vector<8x5xf32> to vector<8x1xf32>
    %39 = vector.extract_strided_slice %5 {offsets = [0, 10], sizes = [8, 5], strides = [1, 1]} : vector<8x20xf32> to vector<8x5xf32>
    %cst_11 = arith.constant dense<0xFF800000> : vector<8xf32>
    %40 = vector.multi_reduction <maximumf>, %39, %cst_11 [1] : vector<8x5xf32> to vector<8xf32>
    %41 = vector.shape_cast %40 : vector<8xf32> to vector<8x1xf32>
    %42 = vector.broadcast %41 : vector<8x1xf32> to vector<8x5xf32>
    %43 = arith.subf %39, %42 : vector<8x5xf32>
    %44 = math.exp %43 : vector<8x5xf32>
    %cst_12 = arith.constant dense<0.000000e+00> : vector<8xf32>
    %45 = vector.multi_reduction <add>, %44, %cst_12 [1] : vector<8x5xf32> to vector<8xf32>
    %46 = vector.shape_cast %45 : vector<8xf32> to vector<8x1xf32>
    %47 = vector.broadcast %46 : vector<8x1xf32> to vector<8x5xf32>
    %48 = arith.divf %44, %47 : vector<8x5xf32>
    %cst_13 = arith.constant 1.000000e+00 : f32
    %49 = vector.broadcast %cst_13 : f32 to vector<8x4xf32>
    %50 = arith.subf %49, %37 : vector<8x4xf32>
    %51 = vector.extract_strided_slice %48 {offsets = [0, 0], sizes = [8, 4], strides = [1, 1]} : vector<8x5xf32> to vector<8x4xf32>
    %52 = arith.mulf %50, %51 : vector<8x4xf32>
    %cst_14 = arith.constant 1.000000e+00 : f32
    %53 = vector.broadcast %cst_14 : f32 to vector<8x1xf32>
    %54 = arith.subf %53, %38 : vector<8x1xf32>
    %55 = vector.broadcast %54 : vector<8x1xf32> to vector<8x4xf32>
    %56 = arith.mulf %52, %55 : vector<8x4xf32>
    %57 = arith.addf %36, %56 : vector<8x4xf32>
    %58 = arith.addf %37, %56 : vector<8x4xf32>
    %59 = vector.extract_strided_slice %48 {offsets = [0, 4], sizes = [8, 1], strides = [1, 1]} : vector<8x5xf32> to vector<8x1xf32>
    %60 = vector.extract_strided_slice %5 {offsets = [0, 15], sizes = [8, 5], strides = [1, 1]} : vector<8x20xf32> to vector<8x5xf32>
    %cst_15 = arith.constant dense<0xFF800000> : vector<8xf32>
    %61 = vector.multi_reduction <maximumf>, %60, %cst_15 [1] : vector<8x5xf32> to vector<8xf32>
    %62 = vector.shape_cast %61 : vector<8xf32> to vector<8x1xf32>
    %63 = vector.broadcast %62 : vector<8x1xf32> to vector<8x5xf32>
    %64 = arith.subf %60, %63 : vector<8x5xf32>
    %65 = math.exp %64 : vector<8x5xf32>
    %cst_16 = arith.constant dense<0.000000e+00> : vector<8xf32>
    %66 = vector.multi_reduction <add>, %65, %cst_16 [1] : vector<8x5xf32> to vector<8xf32>
    %67 = vector.shape_cast %66 : vector<8xf32> to vector<8x1xf32>
    %68 = vector.broadcast %67 : vector<8x1xf32> to vector<8x5xf32>
    %69 = arith.divf %65, %68 : vector<8x5xf32>
    %cst_17 = arith.constant 1.000000e+00 : f32
    %70 = vector.broadcast %cst_17 : f32 to vector<8x4xf32>
    %71 = arith.subf %70, %58 : vector<8x4xf32>
    %72 = vector.extract_strided_slice %69 {offsets = [0, 0], sizes = [8, 4], strides = [1, 1]} : vector<8x5xf32> to vector<8x4xf32>
    %73 = arith.mulf %71, %72 : vector<8x4xf32>
    %cst_18 = arith.constant 1.000000e+00 : f32
    %74 = vector.broadcast %cst_18 : f32 to vector<8x1xf32>
    %75 = arith.subf %74, %59 : vector<8x1xf32>
    %76 = vector.broadcast %75 : vector<8x1xf32> to vector<8x4xf32>
    %77 = arith.mulf %73, %76 : vector<8x4xf32>
    %78 = arith.addf %57, %77 : vector<8x4xf32>
    %c0_19 = arith.constant 0 : index
    %c0_20 = arith.constant 0 : index
    %79 = vector.load %arg4[%c0_19, %c0_20] : memref<8x4xf32, #tpu.memory_space<vmem>>, vector<8x4xf32>
    tpu.vector_store %arg4[%c0_19, %c0_20], %78 {strides = array<i32>} : memref<8x4xf32, #tpu.memory_space<vmem>>, vector<8x4xf32>,
    return
  }
  func.func @transform_0(%arg0: i32) -> (i32, i32) {
    %c0_i32 = arith.constant 0 : i32
    %c0_i32_0 = arith.constant 0 : i32
    return %arg0, %c0_i32 : i32, i32
  }
  func.func @transform_1(%arg0: i32) -> (i32, i32) {
    %c0_i32 = arith.constant 0 : i32
    %c0_i32_0 = arith.constant 0 : i32
    %c0_i32_1 = arith.constant 0 : i32
    return %c0_i32, %c0_i32_0 : i32, i32
  }
  func.func @transform_2(%arg0: i32) -> (i32, i32) {
    %c0_i32 = arith.constant 0 : i32
    %c0_i32_0 = arith.constant 0 : i32
    %c0_i32_1 = arith.constant 0 : i32
    return %c0_i32, %c0_i32_0 : i32, i32
  }
  func.func @transform_3(%arg0: i32) -> (i32, i32) {
    %c0_i32 = arith.constant 0 : i32
    %c0_i32_0 = arith.constant 0 : i32
    return %arg0, %c0_i32 : i32, i32
  }
}

</mosaic_0001>

<bundles_post_ra>
// kernel: tpu_custom_call.1
= control target key start
LH: loop header
LB: loop body
LE: loop exit
PB: predicated region body
PF: predicated region fallthrough
CT: control target
= control target key end

     0   :  { %v260_v0 = vmov 0.0|0.0   ;;  %vm261_vm0 = vmmov 0   ;;  %v262_v4 = vmov 0.0   ;;  %vm26_vm1 = vcmask 261120   ;;  %s321_s1 = inlined_call_operand.vmem [shape: f32[32,20], index: 1, kind: input, shape index: {}]   ;;  %s322_s0 = inlined_call_operand.vmem [shape: f32[8,32], index: 0, kind: input, shape index: {}]   ;;  %s323_s2 = inlined_call_operand.vmem [shape: f32[1,20], index: 2, kind: input, shape index: {}]   ;;  %s324_s3 = inlined_call_operand.vmem [shape: f32[8,4], index: 3, kind: output, shape index: {}]  }
   0x1   :  { %225 = vmatprep.subr.bf16.mxu0 %v260_v0  ;;  %v15_v1 = vld [vmem:[%s321_s1] sm:$0xff]  ;;  %v16_v2 = vld [vmem:[%s321_s1 + $0x8] sm:$0xff]  ;;  %v17_v3 = vld [vmem:[%s321_s1 + $0x10] sm:$0xff]  ;;  %222 = vmatprep.mubr.msk.f32.mxu0 %vm261_vm0, %v262_v4  ;;  %vm171_vm2 = vcmask 162936   ;;  %vm112_vm3 = vcmask 80936   ;;  %vm141_vm4 = vcmask 121936  }
   0x2   :  { %v226_v5 = vpack.c.bf16 %v16_v2, %v15_v1  ;;  %v18_v6 = vld [vmem:[%s321_s1 + $0x18] sm:$0xff]  ;;  %v14_v8 = vld [vmem:[%s322_s0] sm:$0xff]  ;;  %vm100_vm5 = vcmask 39936   ;;  %s263_s0 = smov 123   ;;  %s264_s1 = smov 118   ;;  %v266_v34 = vmov 4  }
   0x3   :  { %v229_v7 = vpack.c.bf16 %v18_v6, %v17_v3  ;;  %v207_v9 = vld [vmem:[%s323_s2] ss:$0 sm:$0xff]  ;;  %s265_s2 = smov 113   ;;  %240 = vset.pattern.permute.xlu0 %v266_v34  ;;  %v267_v41 = vmov 9   ;;  %v268_v46 = vmov 14   ;;  %vm201_vm6 = vcmask 31744  }
   0x4   :  { %227 = vmatpush3.bf16.msra.mxu0 %v226_v5  ;;  %241 = vset.pattern.permute.xlu1 %v267_v41 }
   0x5   :  { %228 = vmatprep.subr.bf16.mxu0 %v260_v0 }
   0x8   :  { %230 = vmatpush3.bf16.msra.mxu0 %v229_v7 }
   0xb   :  { %223 = vmatmul.mubr.msk.f32.vlgmr.msra.gmra.mrb[0].mxu0 %vm26_vm1, %v14_v8 }
  0xde   :  { %v96_v10 = vpop.f32.mrb[0].mxu0 }
  0xdf   :  { %v97_v11 = vadd.f32 %v207_v9, %v96_v10  ;;  %v224_v12 = vpop.f32.mrb[1].mxu0 }
  0xe1   :  { %v172_v13 = vsel %vm171_vm2, %v97_v11, -inf  ;;  %v113_v14 = vsel %vm112_vm3, %v97_v11, -inf  ;;  %v142_v15 = vsel %vm141_vm4, %v97_v11, -inf  ;;  %v101_v16 = vsel %vm100_vm5, %v97_v11, -inf }
  0xe2   :  { %173 = vmax.xlane.f32.xlu1 %v172_v13  ;;  %114 = vmax.xlane.f32.xlu0 %v113_v14 }
  0xe6   :  { %143 = vmax.xlane.f32.xlu0 %v142_v15  ;;  %102 = vmax.xlane.f32.xlu1 %v101_v16 }
 0x16f   :  { %v115_v17 = vpop.xlane.xlu0 %114  ;;  %v174_v19 = vpop.xlane.xlu1 %173 }
 0x170   :  { %v116_v18 = vsub.f32 %v97_v11, %v115_v17  ;;  %v175_v22 = vsub.f32 %v97_v11, %v174_v19 }
 0x172   :  { %v117_v20 = vmul.f32 1.442695, %v116_v18  ;;  %v176_v25 = vmul.f32 1.442695, %v175_v22 }
 0x173   :  { %v144_v21 = vpop.xlane.xlu0 %143  ;;  %v103_v29 = vpop.xlane.xlu1 %102 }
 0x174   :  { %v145_v23 = vsub.f32 %v97_v11, %v144_v21  ;;  %244 = vpow2.f32 %v117_v20  ;;  %v104_v30 = vsub.f32 %v97_v11, %v103_v29 }
 0x176   :  { %v146_v24 = vmul.f32 1.442695, %v145_v23  ;;  %v105_v31 = vmul.f32 1.442695, %v104_v30 }
 0x178   :  { %246 = vpow2.f32 %v146_v24 }
 0x179   :  { %248 = vpow2.f32 %v176_v25 }
 0x17a   :  { %250 = vpow2.f32 %v105_v31 }
 0x17e   :  { %v245_v26 = vpop.eup %244 }
 0x17f   :  { %120 = vrot.lane.b32.xlu0 %v245_v26, %s263_s0 }
 0x182   :  { %v247_v27 = vpop.eup %246 }
 0x183   :  { %149 = vrot.lane.b32.xlu1 %v247_v27, %s264_s1  ;;  %v249_v28 = vpop.eup %248 }
 0x184   :  { %v251_v32 = vpop.eup %250 }
 0x185   :  { %v107_v33 = vsel %vm100_vm5, %v251_v32, 0.0 }
 0x187   :  { %179 = vrot.lane.b32.xlu1 %v249_v28, %s265_s2 }
 0x1ab   :  { %108 = vadd.xlane.f32.xlu1 %v107_v33 }
 0x1f1   :  { %v121_v35 = vpop.permute.xlu0 %120 }
 0x1f2   :  { %v123_v36 = vsel %vm100_vm5, %v121_v35, 0.0 }
 0x1f3   :  { %124 = vadd.xlane.f32.xlu0 %v123_v36 }
 0x1f5   :  { %v150_v37 = vpop.permute.xlu1 %149 }
 0x1f6   :  { %v152_v38 = vsel %vm100_vm5, %v150_v37, 0.0 }
 0x1f7   :  { %153 = vadd.xlane.f32.xlu0 %v152_v38 }
 0x1f9   :  { %v180_v39 = vpop.permute.xlu1 %179 }
 0x1fa   :  { %v182_v40 = vsel %vm100_vm5, %v180_v39, 0.0 }
 0x1fb   :  { %183 = vadd.xlane.f32.xlu0 %v182_v40 }
 0x238   :  { %v109_v42 = vpop.xlane.xlu1 %108 }
 0x239   :  { %252 = vrcp.f32 %v109_v42 }
 0x243   :  { %v253_v43 = vpop.eup %252 }
 0x244   :  { %v111_v44 = vmul.f32 %v253_v43, %v251_v32 }
 0x246   :  { %v128_v45 = vsub.f32 1.0, %v111_v44 }
 0x248   :  { %136 = vperm.xlu0 %240, %v128_v45  }
 0x24c   :  { %243 = vset.pattern.permute.xlu0 %v268_v46 }
 0x280   :  { %v125_v47 = vpop.xlane.xlu0 %124 }
 0x281   :  { %254 = vrcp.f32 %v125_v47 }
 0x284   :  { %v154_v48 = vpop.xlane.xlu0 %153 }
 0x285   :  { %256 = vrcp.f32 %v154_v48 }
 0x288   :  { %v184_v49 = vpop.xlane.xlu0 %183 }
 0x289   :  { %258 = vrcp.f32 %v184_v49 }
 0x28b   :  { %v255_v50 = vpop.eup %254 }
 0x28c   :  { %v127_v51 = vmul.f32 %v255_v50, %v245_v26 }
 0x28e   :  { %130 = vrot.lane.b32.xlu1 %v127_v51, %s263_s0  ;;  %v163_v54 = vsub.f32 1.0, %v127_v51 }
 0x28f   :  { %v257_v52 = vpop.eup %256 }
 0x290   :  { %v156_v53 = vmul.f32 %v257_v52, %v247_v27 }
 0x292   :  { %159 = vrot.lane.b32.xlu1 %v156_v53, %s264_s1  ;;  %v193_v57 = vsub.f32 1.0, %v156_v53 }
 0x293   :  { %v259_v55 = vpop.eup %258 }
 0x294   :  { %v186_v56 = vmul.f32 %v259_v55, %v249_v28 }
 0x296   :  { %166 = vperm.xlu1 %241, %v163_v54  }
 0x29a   :  { %189 = vrot.lane.b32.xlu1 %v186_v56, %s265_s2 }
 0x29b   :  { %242 = vset.pattern.permute.xlu1 %v268_v46 }
 0x29e   :  { %196 = vperm.xlu1 %242, %v193_v57  }
 0x2c7   :  { %v137_v60 = vpop.permute.xlu0 %136 }
 0x300   :  { %v131_v58 = vpop.permute.xlu1 %130 }
 0x301   :  { %v133_v59 = vmul.f32 %v131_v58, %v128_v45 }
 0x303   :  { %v139_v61 = vmul.f32 %v137_v60, %v133_v59 }
 0x304   :  { %v160_v0 = vpop.permute.xlu1 %159 }
 0x305   :  { %v140_v62 = vadd.f32 %v139_v61, %v111_v44 }
 0x307   :  { %v157_v63 = vsub.f32 1.0, %v140_v62 }
 0x309   :  { %v162_v1 = vmul.f32 %v160_v0, %v157_v63 }
 0x315   :  { %v167_v2 = vpop.permute.xlu1 %166 }
 0x316   :  { %v169_v3 = vmul.f32 %v167_v2, %v162_v1 }
 0x318   :  { %v170_v4 = vadd.f32 %v169_v3, %v140_v62 }
 0x319   :  { %v190_v5 = vpop.permute.xlu1 %189 }
 0x31a   :  { %v187_v6 = vsub.f32 1.0, %v170_v4 }
 0x31c   :  { %v192_v7 = vmul.f32 %v190_v5, %v187_v6 }
 0x31d   :  { %v197_v8 = vpop.permute.xlu1 %196 }
 0x31e   :  { %v199_v9 = vmul.f32 %v197_v8, %v192_v7 }
 0x320   :  { %v200_v10 = vadd.f32 %v199_v9, %v170_v4 }
 0x322   :  { %202 = vst.msk [vmem:[%s324_s3] sm:$0xff] %vm201_vm6, %v200_v10 }

</bundles_post_ra>
